<compile_context>
chip_gen: v7x
topology: tpu7x:2x2x1
jax: 0.10.0
libtpu: 0.0.40
codegen_flags: <defaults>
</compile_context>

<pallas_src>
import functools

import numpy as np
import jax
import jax.numpy as jnp
from jax.experimental import pallas as pl
from jax.experimental.pallas import tpu as pltpu


def _rbf_kernel(f_ref, c_ref, w_ref, out_ref, *, a, b, neg_inv_2sig2):
    # f_ref:   [1, TB]  float32  frequencies (batch on lanes)
    # c_ref:   [N, 1]   float32  RBF centers (on sublanes)
    # w_ref:   [N, 1]   float32  Linear(n,1,bias=False).weight, pre-transposed
    # out_ref: [1, TB]  float32  lane-dense output
    f = f_ref[...]                                   # [1, TB]
    # log10(f) normalized to [0,1], folded into a single multiply-add on ln(f)
    f_norm = jnp.log(f) * a + b                      # [1, TB]
    diff = c_ref[...] - f_norm                       # [N, TB] broadcast
    l1 = jnp.exp(diff * diff * neg_inv_2sig2)        # [N, TB] gaussian RBF
    # Linear(n, 1, bias=False): weighted reduce over centers on VPU/XLU
    out_ref[...] = jnp.sum(l1 * w_ref[...], axis=0, keepdims=True)   # [1, TB]


def q10_rbf_forward(f, centers, weight, *, f_min=800.0, f_max=15000.0, sig=0.1,
                    block_b=2048):
    """f: [B] float32, centers: [N] float32, weight: [1, N] float32 -> [B, 1]."""
    B = int(f.shape[0])
    N = int(centers.shape[0])

    log_f_min = float(np.log10(f_min))
    log_f_max = float(np.log10(f_max))
    inv_range = 1.0 / (log_f_max - log_f_min)
    a = float(inv_range / np.log(10.0))          # log10(f)/range == ln(f) * a
    b = float(-log_f_min * inv_range)
    neg_inv_2sig2 = float(-1.0 / (2.0 * float(sig) ** 2))

    # Batch tile: multiple of 128 lanes; pad B up to a whole number of tiles.
    tb = max(128, min(int(block_b), pl.cdiv(B, 128) * 128))
    tb = pl.cdiv(tb, 128) * 128
    b_pad = pl.cdiv(B, tb) * tb

    # Lane-dense layout: batch on lanes; pad with a valid frequency (f_min).
    f_row = jnp.pad(f.astype(jnp.float32), (0, b_pad - B),
                    constant_values=float(f_min)).reshape(1, b_pad)
    c_col = centers.astype(jnp.float32).reshape(N, 1)
    w_col = weight.astype(jnp.float32).reshape(N, 1)   # host-side transpose (free)

    kernel = functools.partial(
        _rbf_kernel, a=a, b=b, neg_inv_2sig2=neg_inv_2sig2)

    out_row = pl.pallas_call(
        kernel,
        out_shape=jax.ShapeDtypeStruct((1, b_pad), jnp.float32),
        grid=(b_pad // tb,),
        in_specs=[
            pl.BlockSpec((1, tb), lambda i: (0, i)),   # f: new tile per step
            pl.BlockSpec((N, 1), lambda i: (0, 0)),    # centers: VMEM-resident
            pl.BlockSpec((N, 1), lambda i: (0, 0)),    # weight: VMEM-resident
        ],
        out_specs=pl.BlockSpec((1, tb), lambda i: (0, i)),
        compiler_params=pltpu.CompilerParams(
            dimension_semantics=("parallel",)),        # megacore on v7x
    )(f_row, c_col, w_col)

    return out_row[0, :B].reshape(B, 1)


def reference_forward(f, centers, weight, *, f_min=800.0, f_max=15000.0, sig=0.1):
    """Pure-JAX reference mirroring the PyTorch forward."""
    log_f_min = np.log10(f_min)
    log_f_max = np.log10(f_max)
    f_norm = (jnp.log10(f) - log_f_min) / (log_f_max - log_f_min)
    f_norm = f_norm[:, None]                           # unsqueeze(-1)
    sq = (centers[None, :] - f_norm) ** 2
    l1 = jnp.exp(-sq / (2.0 * sig ** 2))
    return l1 @ weight.T


if __name__ == "__main__":
    key = jax.random.PRNGKey(0)

    # Module hyperparameters (small, consistent with __init__)
    N_CENTERS = 32
    F_MIN, F_MAX, SIG = 800.0, 15000.0, 0.1
    B = 8  # batch of frequencies

    # Deterministic parameter init:
    #   centers = linspace(0, 1, n)   (init_random=False path)
    #   l2.weight: [1, n]
    centers = jnp.linspace(0.0, 1.0, N_CENTERS, dtype=jnp.float32)
    k_w, k_f = jax.random.split(key)
    weight = jax.random.normal(k_w, (1, N_CENTERS), dtype=jnp.float32) * 0.1

    # Example input frequencies in [f_min, f_max]
    f = jax.random.uniform(
        k_f, (B,), dtype=jnp.float32, minval=F_MIN, maxval=F_MAX
    )

    out = q10_rbf_forward(f, centers, weight, f_min=F_MIN, f_max=F_MAX, sig=SIG)
    out = jax.block_until_ready(out)

    ref = reference_forward(f, centers, weight, f_min=F_MIN, f_max=F_MAX, sig=SIG)
    assert out.shape == (B, 1)
    np.testing.assert_allclose(np.asarray(out), np.asarray(ref), rtol=1e-5, atol=1e-5)

    print("KERNEL_OK")
</pallas_src>

<mosaic_0001>
module attributes {stable_mosaic.version = 11 : i64} {
  func.func @_rbf_kernel(%arg0: i32, %arg1: memref<1x128xf32, #tpu.memory_space<vmem>>, %arg2: memref<32x1xf32, #tpu.memory_space<vmem>>, %arg3: memref<32x1xf32, #tpu.memory_space<vmem>>, %arg4: memref<1x128xf32, #tpu.memory_space<vmem>>) attributes {dimension_semantics = [#tpu.dimension_semantics<parallel>], iteration_bounds = array<i64: 1>, scalar_prefetch = 0 : i64, scratch_operands = 0 : i64, tpu.core_type = #tpu.core_type<tc>, window_params = [{transform_indices = @transform_0, window_bounds = array<i64: 1, 128>}, {pipeline_mode = #tpu.pipeline_mode<synchronous>, transform_indices = @transform_1, window_bounds = array<i64: 32, 1>}, {pipeline_mode = #tpu.pipeline_mode<synchronous>, transform_indices = @transform_2, window_bounds = array<i64: 32, 1>}, {transform_indices = @transform_3, window_bounds = array<i64: 1, 128>}]} {
    %c0 = arith.constant 0 : index
    %c0_0 = arith.constant 0 : index
    %0 = vector.load %arg1[%c0, %c0_0] : memref<1x128xf32, #tpu.memory_space<vmem>>, vector<1x128xf32>
    %1 = math.log %0 : vector<1x128xf32>
    %cst = arith.constant 0.341157943 : f32
    %2 = vector.broadcast %cst : f32 to vector<1x128xf32>
    %3 = arith.mulf %1, %2 : vector<1x128xf32>
    %cst_1 = arith.constant -2.28050828 : f32
    %4 = vector.broadcast %cst_1 : f32 to vector<1x128xf32>
    %5 = arith.addf %3, %4 : vector<1x128xf32>
    %c0_2 = arith.constant 0 : index
    %c0_3 = arith.constant 0 : index
    %6 = vector.load %arg2[%c0_2, %c0_3] : memref<32x1xf32, #tpu.memory_space<vmem>>, vector<32x1xf32>
    %7 = vector.broadcast %6 : vector<32x1xf32> to vector<32x128xf32>
    %8 = vector.broadcast %5 : vector<1x128xf32> to vector<32x128xf32>
    %9 = arith.subf %7, %8 : vector<32x128xf32>
    %10 = arith.mulf %9, %9 : vector<32x128xf32>
    %cst_4 = arith.constant -5.000000e+01 : f32
    %11 = vector.broadcast %cst_4 : f32 to vector<32x128xf32>
    %12 = arith.mulf %10, %11 : vector<32x128xf32>
    %13 = math.exp %12 : vector<32x128xf32>
    %c0_5 = arith.constant 0 : index
    %c0_6 = arith.constant 0 : index
    %14 = vector.load %arg3[%c0_5, %c0_6] : memref<32x1xf32, #tpu.memory_space<vmem>>, vector<32x1xf32>
    %15 = vector.broadcast %14 : vector<32x1xf32> to vector<32x128xf32>
    %16 = arith.mulf %13, %15 : vector<32x128xf32>
    %cst_7 = arith.constant dense<0.000000e+00> : vector<128xf32>
    %17 = vector.multi_reduction <add>, %16, %cst_7 [0] : vector<32x128xf32> to vector<128xf32>
    %18 = vector.shape_cast %17 : vector<128xf32> to vector<1x128xf32>
    %c0_8 = arith.constant 0 : index
    %c0_9 = arith.constant 0 : index
    %19 = vector.load %arg4[%c0_8, %c0_9] : memref<1x128xf32, #tpu.memory_space<vmem>>, vector<1x128xf32>
    tpu.vector_store %arg4[%c0_8, %c0_9], %18 {strides = array<i32>} : memref<1x128xf32, #tpu.memory_space<vmem>>, vector<1x128xf32>,
    return
  }
  func.func @transform_0(%arg0: i32) -> (i32, i32) {
    %c0_i32 = arith.constant 0 : i32
    %c0_i32_0 = arith.constant 0 : i32
    return %c0_i32, %arg0 : i32, i32
  }
  func.func @transform_1(%arg0: i32) -> (i32, i32) {
    %c0_i32 = arith.constant 0 : i32
    %c0_i32_0 = arith.constant 0 : i32
    %c0_i32_1 = arith.constant 0 : i32
    return %c0_i32, %c0_i32_0 : i32, i32
  }
  func.func @transform_2(%arg0: i32) -> (i32, i32) {
    %c0_i32 = arith.constant 0 : i32
    %c0_i32_0 = arith.constant 0 : i32
    %c0_i32_1 = arith.constant 0 : i32
    return %c0_i32, %c0_i32_0 : i32, i32
  }
  func.func @transform_3(%arg0: i32) -> (i32, i32) {
    %c0_i32 = arith.constant 0 : i32
    %c0_i32_0 = arith.constant 0 : i32
    return %c0_i32, %arg0 : i32, i32
  }
}

</mosaic_0001>

<bundles_post_ra>
// kernel: tpu_custom_call.1
= control target key start
LH: loop header
LB: loop body
LE: loop exit
PB: predicated region body
PF: predicated region fallthrough
CT: control target
= control target key end

     0   :  { %v160_v2 = vmov 0   ;;  %s221_s0 = inlined_call_operand.vmem [shape: f32[1,128], index: 0, kind: input, shape index: {}]   ;;  %s222_s1 = inlined_call_operand.vmem [shape: f32[32,1], index: 1, kind: input, shape index: {}]   ;;  %s223_s2 = inlined_call_operand.vmem [shape: f32[32,1], index: 2, kind: input, shape index: {}]   ;;  %s224_s3 = inlined_call_operand.hbm [shape: f32[1,128], index: 3, kind: output, shape index: {}]  }
   0x1   :  { %v22_v0 = vld [vmem:[%s222_s1 + $0x10] sm:$0xff]  ;;  %v20_v1 = vld [vmem:[%s222_s1] sm:$0xff]  ;;  %125 = vset.pattern.permute.xlu1 %v160_v2  ;;  %124 = vset.pattern.permute.xlu0 %v160_v2  ;;  %v23_v3 = vld [vmem:[%s222_s1 + $0x18] sm:$0xff] }
   0x2   :  { %36 = vperm.xlu1 %125, %v22_v0   ;;  %26 = vperm.xlu0 %124, %v20_v1   ;;  %v21_v4 = vld [vmem:[%s222_s1 + $0x8] sm:$0xff] }
   0x3   :  { %8 = vsyncpa [#allocation3], 0  ;;  %v71_v5 = vld [vmem:[%s223_s2 + $0x8] sm:$0xff]  ;;  %v70_v6 = vld [vmem:[%s223_s2] sm:$0xff]  ;;  %v45_v11 = vlaneseq }
   0x4   :  { %v73_v7 = vld [vmem:[%s223_s2 + $0x18] sm:$0xff]  ;;  %v72_v8 = vld [vmem:[%s223_s2 + $0x10] sm:$0xff]  ;;  %v15_v9 = vld [vmem:[%s221_s0] sm:$0x1]  ;;  %s161_s0 = smov [#allocation2]  }
   0x5   :  { %126 = vlog2.f32 %v15_v9  ;;  %v46_v13 = vshrl.u32 %v45_v11, 7  ;;  %s114_s2 = sshll.u32 %s161_s0, 4  ;;  %s115_s2 = int_to_ptr.vmem [resolvable:$true] %s114_s2 }
   0x6   :  { %41 = vperm.xlu1 %125, %v23_v3   ;;  %31 = vperm.xlu0 %124, %v21_v4   ;;  %s136_s29 = scalar_lea.vmem %s115_s2, 16  ;;  %s140_s30 = scalar_lea.vmem %s115_s2, 32 }
   0x7   :  { %v47_v15 = vsub.s32 0, %v46_v13  ;;  %p137_p0 = scmp.ne.s32.totalorder %s115_s2, %s136_s29  ;;  %p141_p1 = scmp.lt.s32.totalorder %s115_s2, %s115_s2 }
   0x8   :  { %p142_p2 = scmp.lt.s32.totalorder %s140_s30, %s136_s29 }
   0xa   :  { %81 = vperm.xlu1 %125, %v71_v5   ;;  %76 = vperm.xlu0 %124, %v70_v6   ;;  %p143_p3 = por %p142_p2, %p141_p1 }
   0xc   :  { %p144_p4 = pnand %p143_p3, %p137_p0 }
   0xe   :  { %91 = vperm.xlu1 %125, %v73_v7   ;;  %86 = vperm.xlu0 %124, %v72_v8  }
   0xf   :  { %v127_v10 = vpop.eup %126 }
  0x10   :  { %v17_v12 = vmul.f32 0.6931472, %v127_v10 }
  0x12   :  { %v18_v14 = vmul.f32 0.34115794, %v17_v12 }
  0x14   :  { %v19_v16 = vadd.f32 -2.2805083, %v18_v14 }
  0x16   :  { %v48_v17 = vrot.slane %v19_v16, %v47_v15 }
  0x81   :  { %v37_v18 = vpop.permute.xlu1 %36  ;;  %v27_v19 = vpop.permute.xlu0 %26 }
  0x82   :  { %v52_v20 = vsub.f32 %v37_v18, %v48_v17  ;;  %v50_v21 = vsub.f32 %v27_v19, %v48_v17 }
  0x84   :  { %v56_v22 = vmul.f32 %v52_v20, %v52_v20  ;;  %v54_v23 = vmul.f32 %v50_v21, %v50_v21 }
  0x85   :  { %v42_v24 = vpop.permute.xlu1 %41  ;;  %v32_v25 = vpop.permute.xlu0 %31 }
  0x86   :  { %v60_v26 = vmul.f32 -50.0, %v56_v22  ;;  %v58_v27 = vmul.f32 -50.0, %v54_v23  ;;  %v53_v28 = vsub.f32 %v42_v24, %v48_v17  ;;  %v51_v29 = vsub.f32 %v32_v25, %v48_v17 }
  0x88   :  { %v57_v30 = vmul.f32 %v53_v28, %v53_v28  ;;  %v55_v31 = vmul.f32 %v51_v29, %v51_v29  ;;  %v62_v32 = vmul.f32 1.442695, %v58_v27  ;;  %v66_v33 = vmul.f32 1.442695, %v60_v26 }
  0x89   :  { %v77_v38 = vpop.permute.xlu0 %76  ;;  %v82_v40 = vpop.permute.xlu1 %81 }
  0x8a   :  { %v61_v34 = vmul.f32 -50.0, %v57_v30  ;;  %v59_v35 = vmul.f32 -50.0, %v55_v31  ;;  %128 = vpow2.f32 %v62_v32 }
  0x8b   :  { %130 = vpow2.f32 %v66_v33 }
  0x8c   :  { %v64_v36 = vmul.f32 1.442695, %v59_v35  ;;  %v68_v37 = vmul.f32 1.442695, %v61_v34 }
  0x8d   :  { %v87_v46 = vpop.permute.xlu0 %86  ;;  %v92_v49 = vpop.permute.xlu1 %91 }
  0x8e   :  { %132 = vpow2.f32 %v64_v36 }
  0x8f   :  { %134 = vpow2.f32 %v68_v37 }
  0x94   :  { %v129_v39 = vpop.eup %128 }
  0x95   :  { %v131_v41 = vpop.eup %130  ;;  %v94_v44 = vmul.f32 %v129_v39, %v77_v38 }
  0x96   :  { %v96_v48 = vmul.f32 %v131_v41, %v87_v46 }
  0x98   :  { %v133_v42 = vpop.eup %132 }
  0x99   :  { %v95_v43 = vmul.f32 %v133_v42, %v82_v40  ;;  %v135_v45 = vpop.eup %134 }
  0x9a   :  { %v97_v50 = vmul.f32 %v135_v45, %v92_v49 }
  0x9b   :  { %v98_v47 = vadd.f32 %v95_v43, %v94_v44 }
  0x9d   :  { %v99_v51 = vadd.f32 %v98_v47, %v96_v48 }
  0x9f   :  { %v100_v52 = vadd.f32 %v99_v51, %v97_v50 }
  0xa1   :  { %v101_v53 = vrot.slane %v100_v52, 4 }
  0xa3   :  { %v102_v54 = vadd.f32 %v101_v53, %v100_v52 }
  0xa5   :  { %v103_v55 = vrot.slane %v102_v54, 2 }
  0xa7   :  { %v104_v56 = vadd.f32 %v103_v55, %v102_v54 }
  0xa9   :  { %v105_v57 = vrot.slane %v104_v56, 1 }
  0xab   :  { %v106_v58 = vadd.f32 %v105_v57, %v104_v56 }
  0xad   :  { %107 = vst [vmem:[#allocation2] sm:$0x1] %v106_v58 }
  0xae   :  { %147 = shalt.err (!%p144_p4)
}
  0xaf   :  { %s148_s6 = scalar_lea.hbm %s224_s3, 16 }
  0xb0   :  { %p149_p5 = scmp.ne.s32.totalorder %s224_s3, %s148_s6  ;;  %p152_p6 = scmp.lt.u32.totalorder %s148_s6, %s224_s3 }
  0xb2   :  { %p154_p7 = pnand %p152_p6, %p149_p5 }
  0xb4   :  { %157 = shalt.err (!%p154_p7)
}
  0xb5   :  { %117 = dma.vmem_to_hbm [thread:$0]  %s115_s2, 16, %s224_s3, [#allocation3]  }
  0xb6   :  { %158 = dma.done.wait [#allocation3], 16  }
  0xb7   :  { %159 = vsyncadd [#allocation3], 4294967280 }
  0xb8   :  { %121 = vsyncpa [#allocation3], 1 }

</bundles_post_ra>
